<compile_context>
chip_gen: v7x
topology: tpu7x:2x2x1
jax: 0.10.0
libtpu: 0.0.40
codegen_flags: <defaults>
</compile_context>

<pallas_src>
import jax
import jax.numpy as jnp
from jax import lax
from jax.experimental import pallas as pl
from jax.experimental.pallas import tpu as pltpu


def _make_down_kernel(C_in, C_out, Hp, Wp):
    P = Hp * Wp           # flattened pooled spatial size (lane dim)
    PAD = Wp + 1          # flat zero padding so all 9 tap offsets stay in range
    f32 = jnp.float32

    def kernel(x_ref, sel_ref, w1_ref, b1_ref, w2_ref, b2_ref, cmask_ref, o_ref):
        # ---------------- MaxPool2d(2): one MXU selection matmul ----------------
        # cand[c, k*P + p] = x[c, base(p) + off_k]  for the 4 window offsets k.
        xin = x_ref[0].astype(f32)                                        # (C_in, H*W)
        cand = jnp.dot(xin, sel_ref[...], preferred_element_type=f32)     # (C_in, 4P)
        pooled = jnp.maximum(
            jnp.maximum(cand[:, 0:P], cand[:, P:2 * P]),
            jnp.maximum(cand[:, 2 * P:3 * P], cand[:, 3 * P:4 * P]))      # (C_in, P)

        mask_l = cmask_ref[0:1, :]   # zeros where w == 0      (tap ow = -1)
        mask_r = cmask_ref[1:2, :]   # zeros where w == Wp - 1 (tap ow = +1)

        # -------- Conv3x3(pad=1) + folded BN + ReLU as one im2col matmul --------
        def conv_bn_relu(act, n_in, w_ref, b_ref):
            # act: (n_in, P) f32, spatial flattened row-major (h*Wp + w) in lanes.
            zp = jnp.zeros((n_in, PAD), f32)
            padded = jnp.concatenate([zp, act, zp], axis=1)               # (n_in, P+2*PAD)
            taps = []
            for oh in (-1, 0, 1):
                for ow in (-1, 0, 1):
                    off = oh * Wp + ow
                    t = padded[:, PAD + off: PAD + off + P]               # (n_in, P)
                    if ow == -1:
                        t = t * mask_l        # kill row-boundary wrap (w-1 < 0)
                    elif ow == 1:
                        t = t * mask_r        # kill row-boundary wrap (w+1 >= Wp)
                    taps.append(t)
            im2col = jnp.concatenate(taps, axis=0)                        # (9*n_in, P)
            out = jnp.dot(w_ref[...], im2col, preferred_element_type=f32)  # (C_out, P)
            return jnp.maximum(out + b_ref[...], 0.0)

        mid = conv_bn_relu(pooled, C_in, w1_ref, b1_ref)                  # (C_out, P)
        out = conv_bn_relu(mid, C_out, w2_ref, b2_ref)                    # (C_out, P)
        o_ref[0] = out.astype(o_ref.dtype)

    return kernel


def down_forward(x, params, *, eps=1e-5):
    """Down.forward: MaxPool2d(2) -> (Conv3x3 + BN + ReLU) x 2  (eval-mode BN).

    x      : (N, C_in, H, W)   with even H, W
    params : (w1, b1, g1, beta1, mean1, var1, w2, b2, g2, beta2, mean2, var2)
    returns: (N, C_out, H//2, W//2)
    """
    (w1, b1, g1, be1, m1, v1, w2, b2, g2, be2, m2, v2) = params
    N, C_in, H, W = x.shape
    C_out = w1.shape[0]
    assert H % 2 == 0 and W % 2 == 0, "MaxPool2d(2) path assumes even H, W"
    Hp, Wp = H // 2, W // 2
    P = Hp * Wp
    HW = H * W
    f32 = jnp.float32

    # ---- Fold eval-mode BatchNorm into conv weights / biases (wrapper-side) ----
    # im2col row order is tap-major (dh*3 + dw), channel-minor -> transpose OIHW
    # weights to (O, H, W, I) before flattening.
    s1 = (g1 / jnp.sqrt(v1 + eps)).astype(f32)
    w1_flat = (w1.astype(f32) * s1[:, None, None, None]).transpose(0, 2, 3, 1)
    w1_flat = w1_flat.reshape(C_out, 9 * C_in)
    b1_f = ((b1 - m1) * s1 + be1).astype(f32).reshape(C_out, 1)
    s2 = (g2 / jnp.sqrt(v2 + eps)).astype(f32)
    w2_flat = (w2.astype(f32) * s2[:, None, None, None]).transpose(0, 2, 3, 1)
    w2_flat = w2_flat.reshape(C_out, 9 * C_out)
    b2_f = ((b2 - m2) * s2 + be2).astype(f32).reshape(C_out, 1)

    # ---- MaxPool selection matrix + conv edge masks (built once, VMEM-resident) ----
    p_idx = jnp.arange(P, dtype=jnp.int32)
    h_idx = p_idx // Wp
    w_idx = p_idx % Wp
    base = 2 * h_idx * W + 2 * w_idx                                  # (P,)
    q_idx = jnp.arange(HW, dtype=jnp.int32)[:, None]                  # (HW, 1)
    sel = jnp.concatenate(
        [(q_idx == (base + dh * W + dw)[None, :]).astype(f32)
         for dh in (0, 1) for dw in (0, 1)], axis=1)                  # (HW, 4P)
    colmask = jnp.stack([(w_idx >= 1).astype(f32),
                         (w_idx <= Wp - 2).astype(f32)], axis=0)      # (2, P)

    x_flat = x.reshape(N, C_in, HW)   # free reshape: lane-dense input blocks

    kernel = _make_down_kernel(C_in, C_out, Hp, Wp)
    const2 = lambda n: (0, 0)

    out_flat = pl.pallas_call(
        kernel,
        out_shape=jax.ShapeDtypeStruct((N, C_out, P), x.dtype),
        grid_spec=pltpu.PrefetchScalarGridSpec(
            num_scalar_prefetch=0,
            grid=(N,),
            in_specs=[
                pl.BlockSpec((1, C_in, HW), lambda n: (n, 0, 0)),
                pl.BlockSpec((HW, 4 * P), const2),          # pool selection matrix
                pl.BlockSpec((C_out, 9 * C_in), const2),    # folded conv1 weights
                pl.BlockSpec((C_out, 1), const2),           # folded conv1 bias
                pl.BlockSpec((C_out, 9 * C_out), const2),   # folded conv2 weights
                pl.BlockSpec((C_out, 1), const2),           # folded conv2 bias
                pl.BlockSpec((2, P), const2),               # w-boundary masks
            ],
            out_specs=pl.BlockSpec((1, C_out, P), lambda n: (n, 0, 0)),
        ),
        compiler_params=pltpu.CompilerParams(
            dimension_semantics=("parallel",),
        ),
    )(x_flat, sel, w1_flat, b1_f, w2_flat, b2_f, colmask)

    # Wrapper-side layout plumbing only: (N, C_out, Hp*Wp) -> (N, C_out, Hp, Wp).
    return out_flat.reshape(N, C_out, Hp, Wp)


if __name__ == "__main__":
    key = jax.random.PRNGKey(0)
    keys = jax.random.split(key, 12)

    N, C_in, H, W = 2, 4, 16, 16
    C_out = 8

    x = jax.random.normal(keys[0], (N, C_in, H, W), dtype=jnp.float32)

    def conv_init(k, co, ci):
        bound = 1.0 / jnp.sqrt(jnp.float32(ci * 9))
        kw, kb = jax.random.split(k)
        w = jax.random.uniform(kw, (co, ci, 3, 3), jnp.float32, -bound, bound)
        b = jax.random.uniform(kb, (co,), jnp.float32, -bound, bound)
        return w, b

    w1, b1 = conv_init(keys[1], C_out, C_in)
    w2, b2 = conv_init(keys[2], C_out, C_out)
    g1 = jax.random.uniform(keys[3], (C_out,), jnp.float32, 0.5, 1.5)
    be1 = 0.1 * jax.random.normal(keys[4], (C_out,), jnp.float32)
    m1 = 0.1 * jax.random.normal(keys[5], (C_out,), jnp.float32)
    v1 = jax.random.uniform(keys[6], (C_out,), jnp.float32, 0.5, 1.5)
    g2 = jax.random.uniform(keys[7], (C_out,), jnp.float32, 0.5, 1.5)
    be2 = 0.1 * jax.random.normal(keys[8], (C_out,), jnp.float32)
    m2 = 0.1 * jax.random.normal(keys[9], (C_out,), jnp.float32)
    v2 = jax.random.uniform(keys[10], (C_out,), jnp.float32, 0.5, 1.5)

    params = (w1, b1, g1, be1, m1, v1, w2, b2, g2, be2, m2, v2)

    out = down_forward(x, params)
    jax.block_until_ready(out)

    # Pure-JAX reference (same math: maxpool -> conv+bias -> eval BN -> ReLU, x2).
    def ref_forward(xin):
        xp = xin.reshape(N, C_in, H // 2, 2, W // 2, 2).max(axis=(3, 5))

        def block(y, w, b, g, be, m, v):
            o = lax.conv_general_dilated(
                y, w, window_strides=(1, 1), padding="SAME",
                dimension_numbers=("NCHW", "OIHW", "NCHW"),
                precision=lax.Precision.HIGHEST)
            o = o + b[None, :, None, None]
            o = g[None, :, None, None] * (o - m[None, :, None, None]) / jnp.sqrt(
                v[None, :, None, None] + 1e-5) + be[None, :, None, None]
            return jnp.maximum(o, 0.0)

        h = block(xp, w1, b1, g1, be1, m1, v1)
        return block(h, w2, b2, g2, be2, m2, v2)

    ref = ref_forward(x)
    assert out.shape == (N, C_out, H // 2, W // 2)
    max_err = float(jnp.max(jnp.abs(out - ref)))
    assert jnp.allclose(out, ref, atol=1e-4, rtol=1e-4), max_err

    print("KERNEL_OK")
</pallas_src>

<mosaic_0001>
module attributes {stable_mosaic.version = 11 : i64} {
  func.func @kernel(%arg0: i32, %arg1: memref<1x4x256xf32, #tpu.memory_space<vmem>>, %arg2: memref<256x256xf32, #tpu.memory_space<vmem>>, %arg3: memref<8x36xf32, #tpu.memory_space<vmem>>, %arg4: memref<8x1xf32, #tpu.memory_space<vmem>>, %arg5: memref<8x72xf32, #tpu.memory_space<vmem>>, %arg6: memref<8x1xf32, #tpu.memory_space<vmem>>, %arg7: memref<2x64xf32, #tpu.memory_space<vmem>>, %arg8: memref<1x8x64xf32, #tpu.memory_space<vmem>>) attributes {dimension_semantics = [#tpu.dimension_semantics<parallel>], iteration_bounds = array<i64: 2>, scalar_prefetch = 0 : i64, scratch_operands = 0 : i64, tpu.core_type = #tpu.core_type<tc>, window_params = [{transform_indices = @transform_0, window_bounds = array<i64: 1, 4, 256>}, {pipeline_mode = #tpu.pipeline_mode<synchronous>, transform_indices = @transform_1, window_bounds = array<i64: 256, 256>}, {pipeline_mode = #tpu.pipeline_mode<synchronous>, transform_indices = @transform_2, window_bounds = array<i64: 8, 36>}, {pipeline_mode = #tpu.pipeline_mode<synchronous>, transform_indices = @transform_3, window_bounds = array<i64: 8, 1>}, {pipeline_mode = #tpu.pipeline_mode<synchronous>, transform_indices = @transform_4, window_bounds = array<i64: 8, 72>}, {pipeline_mode = #tpu.pipeline_mode<synchronous>, transform_indices = @transform_5, window_bounds = array<i64: 8, 1>}, {pipeline_mode = #tpu.pipeline_mode<synchronous>, transform_indices = @transform_6, window_bounds = array<i64: 2, 64>}, {transform_indices = @transform_7, window_bounds = array<i64: 1, 8, 64>}]} {
    %c0 = arith.constant 0 : index
    %c0_0 = arith.constant 0 : index
    %c0_1 = arith.constant 0 : index
    %0 = vector.load %arg1[%c0, %c0_0, %c0_1] : memref<1x4x256xf32, #tpu.memory_space<vmem>>, vector<1x4x256xf32>
    %1 = vector.shape_cast %0 : vector<1x4x256xf32> to vector<4x256xf32>
    %c0_2 = arith.constant 0 : index
    %c0_3 = arith.constant 0 : index
    %2 = vector.load %arg2[%c0_2, %c0_3] : memref<256x256xf32, #tpu.memory_space<vmem>>, vector<256x256xf32>
    %cst = arith.constant dense<0.000000e+00> : vector<4x256xf32>
    %3 = tpu.matmul %1, %2, %cst {dimension_numbers = #tpu.dot_dimension_numbers<[1], [0], [0], [1], [0, 0, 1, 1], [], []>} : vector<4x256xf32>, vector<256x256xf32>, vector<4x256xf32> -> vector<4x256xf32>
    %4 = vector.extract_strided_slice %3 {offsets = [0, 0], sizes = [4, 64], strides = [1, 1]} : vector<4x256xf32> to vector<4x64xf32>
    %5 = vector.extract_strided_slice %3 {offsets = [0, 64], sizes = [4, 64], strides = [1, 1]} : vector<4x256xf32> to vector<4x64xf32>
    %6 = arith.maximumf %4, %5 : vector<4x64xf32>
    %7 = vector.extract_strided_slice %3 {offsets = [0, 128], sizes = [4, 64], strides = [1, 1]} : vector<4x256xf32> to vector<4x64xf32>
    %8 = vector.extract_strided_slice %3 {offsets = [0, 192], sizes = [4, 64], strides = [1, 1]} : vector<4x256xf32> to vector<4x64xf32>
    %9 = arith.maximumf %7, %8 : vector<4x64xf32>
    %10 = arith.maximumf %6, %9 : vector<4x64xf32>
    %c0_4 = arith.constant 0 : index
    %c0_5 = arith.constant 0 : index
    %11 = vector.load %arg7[%c0_4, %c0_5] : memref<2x64xf32, #tpu.memory_space<vmem>>, vector<1x64xf32>
    %c1 = arith.constant 1 : index
    %c0_6 = arith.constant 0 : index
    %12 = vector.load %arg7[%c1, %c0_6] : memref<2x64xf32, #tpu.memory_space<vmem>>, vector<1x64xf32>
    %cst_7 = arith.constant 0.000000e+00 : f32
    %13 = vector.broadcast %cst_7 : f32 to vector<4x9xf32>
    %14 = tpu.concatenate %13, %10, %13 in 1 : vector<4x9xf32>, vector<4x64xf32>, vector<4x9xf32> -> vector<4x82xf32>
    %15 = vector.extract_strided_slice %14 {offsets = [0, 0], sizes = [4, 64], strides = [1, 1]} : vector<4x82xf32> to vector<4x64xf32>
    %16 = vector.broadcast %11 : vector<1x64xf32> to vector<4x64xf32>
    %17 = arith.mulf %15, %16 : vector<4x64xf32>
    %18 = vector.extract_strided_slice %14 {offsets = [0, 1], sizes = [4, 64], strides = [1, 1]} : vector<4x82xf32> to vector<4x64xf32>
    %19 = vector.extract_strided_slice %14 {offsets = [0, 2], sizes = [4, 64], strides = [1, 1]} : vector<4x82xf32> to vector<4x64xf32>
    %20 = vector.broadcast %12 : vector<1x64xf32> to vector<4x64xf32>
    %21 = arith.mulf %19, %20 : vector<4x64xf32>
    %22 = vector.extract_strided_slice %14 {offsets = [0, 8], sizes = [4, 64], strides = [1, 1]} : vector<4x82xf32> to vector<4x64xf32>
    %23 = vector.broadcast %11 : vector<1x64xf32> to vector<4x64xf32>
    %24 = arith.mulf %22, %23 : vector<4x64xf32>
    %25 = vector.extract_strided_slice %14 {offsets = [0, 9], sizes = [4, 64], strides = [1, 1]} : vector<4x82xf32> to vector<4x64xf32>
    %26 = vector.extract_strided_slice %14 {offsets = [0, 10], sizes = [4, 64], strides = [1, 1]} : vector<4x82xf32> to vector<4x64xf32>
    %27 = vector.broadcast %12 : vector<1x64xf32> to vector<4x64xf32>
    %28 = arith.mulf %26, %27 : vector<4x64xf32>
    %29 = vector.extract_strided_slice %14 {offsets = [0, 16], sizes = [4, 64], strides = [1, 1]} : vector<4x82xf32> to vector<4x64xf32>
    %30 = vector.broadcast %11 : vector<1x64xf32> to vector<4x64xf32>
    %31 = arith.mulf %29, %30 : vector<4x64xf32>
    %32 = vector.extract_strided_slice %14 {offsets = [0, 17], sizes = [4, 64], strides = [1, 1]} : vector<4x82xf32> to vector<4x64xf32>
    %33 = vector.extract_strided_slice %14 {offsets = [0, 18], sizes = [4, 64], strides = [1, 1]} : vector<4x82xf32> to vector<4x64xf32>
    %34 = vector.broadcast %12 : vector<1x64xf32> to vector<4x64xf32>
    %35 = arith.mulf %33, %34 : vector<4x64xf32>
    %36 = tpu.concatenate %17, %18, %21, %24, %25, %28, %31, %32, %35 in 0 : vector<4x64xf32>, vector<4x64xf32>, vector<4x64xf32>, vector<4x64xf32>, vector<4x64xf32>, vector<4x64xf32>, vector<4x64xf32>, vector<4x64xf32>, vector<4x64xf32> -> vector<36x64xf32>
    %c0_8 = arith.constant 0 : index
    %c0_9 = arith.constant 0 : index
    %37 = vector.load %arg3[%c0_8, %c0_9] : memref<8x36xf32, #tpu.memory_space<vmem>>, vector<8x36xf32>
    %cst_10 = arith.constant dense<0.000000e+00> : vector<8x64xf32>
    %38 = tpu.matmul %37, %36, %cst_10 {dimension_numbers = #tpu.dot_dimension_numbers<[1], [0], [0], [1], [0, 0, 1, 1], [], []>} : vector<8x36xf32>, vector<36x64xf32>, vector<8x64xf32> -> vector<8x64xf32>
    %c0_11 = arith.constant 0 : index
    %c0_12 = arith.constant 0 : index
    %39 = vector.load %arg4[%c0_11, %c0_12] : memref<8x1xf32, #tpu.memory_space<vmem>>, vector<8x1xf32>
    %40 = vector.broadcast %39 : vector<8x1xf32> to vector<8x64xf32>
    %41 = arith.addf %38, %40 : vector<8x64xf32>
    %cst_13 = arith.constant 0.000000e+00 : f32
    %42 = vector.broadcast %cst_13 : f32 to vector<8x64xf32>
    %43 = arith.maximumf %41, %42 : vector<8x64xf32>
    %cst_14 = arith.constant 0.000000e+00 : f32
    %44 = vector.broadcast %cst_14 : f32 to vector<8x9xf32>
    %45 = tpu.concatenate %44, %43, %44 in 1 : vector<8x9xf32>, vector<8x64xf32>, vector<8x9xf32> -> vector<8x82xf32>
    %46 = vector.extract_strided_slice %45 {offsets = [0, 0], sizes = [8, 64], strides = [1, 1]} : vector<8x82xf32> to vector<8x64xf32>
    %47 = vector.broadcast %11 : vector<1x64xf32> to vector<8x64xf32>
    %48 = arith.mulf %46, %47 : vector<8x64xf32>
    %49 = vector.extract_strided_slice %45 {offsets = [0, 1], sizes = [8, 64], strides = [1, 1]} : vector<8x82xf32> to vector<8x64xf32>
    %50 = vector.extract_strided_slice %45 {offsets = [0, 2], sizes = [8, 64], strides = [1, 1]} : vector<8x82xf32> to vector<8x64xf32>
    %51 = vector.broadcast %12 : vector<1x64xf32> to vector<8x64xf32>
    %52 = arith.mulf %50, %51 : vector<8x64xf32>
    %53 = vector.extract_strided_slice %45 {offsets = [0, 8], sizes = [8, 64], strides = [1, 1]} : vector<8x82xf32> to vector<8x64xf32>
    %54 = vector.broadcast %11 : vector<1x64xf32> to vector<8x64xf32>
    %55 = arith.mulf %53, %54 : vector<8x64xf32>
    %56 = vector.extract_strided_slice %45 {offsets = [0, 9], sizes = [8, 64], strides = [1, 1]} : vector<8x82xf32> to vector<8x64xf32>
    %57 = vector.extract_strided_slice %45 {offsets = [0, 10], sizes = [8, 64], strides = [1, 1]} : vector<8x82xf32> to vector<8x64xf32>
    %58 = vector.broadcast %12 : vector<1x64xf32> to vector<8x64xf32>
    %59 = arith.mulf %57, %58 : vector<8x64xf32>
    %60 = vector.extract_strided_slice %45 {offsets = [0, 16], sizes = [8, 64], strides = [1, 1]} : vector<8x82xf32> to vector<8x64xf32>
    %61 = vector.broadcast %11 : vector<1x64xf32> to vector<8x64xf32>
    %62 = arith.mulf %60, %61 : vector<8x64xf32>
    %63 = vector.extract_strided_slice %45 {offsets = [0, 17], sizes = [8, 64], strides = [1, 1]} : vector<8x82xf32> to vector<8x64xf32>
    %64 = vector.extract_strided_slice %45 {offsets = [0, 18], sizes = [8, 64], strides = [1, 1]} : vector<8x82xf32> to vector<8x64xf32>
    %65 = vector.broadcast %12 : vector<1x64xf32> to vector<8x64xf32>
    %66 = arith.mulf %64, %65 : vector<8x64xf32>
    %67 = tpu.concatenate %48, %49, %52, %55, %56, %59, %62, %63, %66 in 0 : vector<8x64xf32>, vector<8x64xf32>, vector<8x64xf32>, vector<8x64xf32>, vector<8x64xf32>, vector<8x64xf32>, vector<8x64xf32>, vector<8x64xf32>, vector<8x64xf32> -> vector<72x64xf32>
    %c0_15 = arith.constant 0 : index
    %c0_16 = arith.constant 0 : index
    %68 = vector.load %arg5[%c0_15, %c0_16] : memref<8x72xf32, #tpu.memory_space<vmem>>, vector<8x72xf32>
    %cst_17 = arith.constant dense<0.000000e+00> : vector<8x64xf32>
    %69 = tpu.matmul %68, %67, %cst_17 {dimension_numbers = #tpu.dot_dimension_numbers<[1], [0], [0], [1], [0, 0, 1, 1], [], []>} : vector<8x72xf32>, vector<72x64xf32>, vector<8x64xf32> -> vector<8x64xf32>
    %c0_18 = arith.constant 0 : index
    %c0_19 = arith.constant 0 : index
    %70 = vector.load %arg6[%c0_18, %c0_19] : memref<8x1xf32, #tpu.memory_space<vmem>>, vector<8x1xf32>
    %71 = vector.broadcast %70 : vector<8x1xf32> to vector<8x64xf32>
    %72 = arith.addf %69, %71 : vector<8x64xf32>
    %cst_20 = arith.constant 0.000000e+00 : f32
    %73 = vector.broadcast %cst_20 : f32 to vector<8x64xf32>
    %74 = arith.maximumf %72, %73 : vector<8x64xf32>
    %c0_21 = arith.constant 0 : index
    %c0_22 = arith.constant 0 : index
    %c0_23 = arith.constant 0 : index
    %75 = vector.load %arg8[%c0_21, %c0_22, %c0_23] : memref<1x8x64xf32, #tpu.memory_space<vmem>>, vector<1x8x64xf32>
    %76 = vector.shape_cast %75 : vector<1x8x64xf32> to vector<8x64xf32>
    %77 = vector.shape_cast %74 : vector<8x64xf32> to vector<1x8x64xf32>
    tpu.vector_store %arg8[%c0_21, %c0_22, %c0_23], %77 {strides = array<i32>} : memref<1x8x64xf32, #tpu.memory_space<vmem>>, vector<1x8x64xf32>,
    return
  }
  func.func @transform_0(%arg0: i32) -> (i32, i32, i32) {
    %c0_i32 = arith.constant 0 : i32
    %c0_i32_0 = arith.constant 0 : i32
    %c0_i32_1 = arith.constant 0 : i32
    return %arg0, %c0_i32, %c0_i32_0 : i32, i32, i32
  }
  func.func @transform_1(%arg0: i32) -> (i32, i32) {
    %c0_i32 = arith.constant 0 : i32
    %c0_i32_0 = arith.constant 0 : i32
    %c0_i32_1 = arith.constant 0 : i32
    return %c0_i32, %c0_i32_0 : i32, i32
  }
  func.func @transform_2(%arg0: i32) -> (i32, i32) {
    %c0_i32 = arith.constant 0 : i32
    %c0_i32_0 = arith.constant 0 : i32
    %c0_i32_1 = arith.constant 0 : i32
    return %c0_i32, %c0_i32_0 : i32, i32
  }
  func.func @transform_3(%arg0: i32) -> (i32, i32) {
    %c0_i32 = arith.constant 0 : i32
    %c0_i32_0 = arith.constant 0 : i32
    %c0_i32_1 = arith.constant 0 : i32
    return %c0_i32, %c0_i32_0 : i32, i32
  }
  func.func @transform_4(%arg0: i32) -> (i32, i32) {
    %c0_i32 = arith.constant 0 : i32
    %c0_i32_0 = arith.constant 0 : i32
    %c0_i32_1 = arith.constant 0 : i32
    return %c0_i32, %c0_i32_0 : i32, i32
  }
  func.func @transform_5(%arg0: i32) -> (i32, i32) {
    %c0_i32 = arith.constant 0 : i32
    %c0_i32_0 = arith.constant 0 : i32
    %c0_i32_1 = arith.constant 0 : i32
    return %c0_i32, %c0_i32_0 : i32, i32
  }
  func.func @transform_6(%arg0: i32) -> (i32, i32) {
    %c0_i32 = arith.constant 0 : i32
    %c0_i32_0 = arith.constant 0 : i32
    %c0_i32_1 = arith.constant 0 : i32
    return %c0_i32, %c0_i32_0 : i32, i32
  }
  func.func @transform_7(%arg0: i32) -> (i32, i32, i32) {
    %c0_i32 = arith.constant 0 : i32
    %c0_i32_0 = arith.constant 0 : i32
    %c0_i32_1 = arith.constant 0 : i32
    return %arg0, %c0_i32, %c0_i32_0 : i32, i32, i32
  }
}

</mosaic_0001>

<bundles_post_ra>
// kernel: tpu_custom_call.1
= control target key start
LH: loop header
LB: loop body
LE: loop exit
PB: predicated region body
PF: predicated region fallthrough
CT: control target
= control target key end

     0   :  { %12 = vsyncpa [#allocation3], 0  ;;  %s1418_s0 = inlined_call_operand.vmem [shape: f32[2,4,256], index: 0, kind: input, shape index: {}]   ;;  %s1419_s1 = inlined_call_operand.hbm [shape: f32[256,256], index: 1, kind: input, shape index: {}]   ;;  %s1420_s2 = inlined_call_operand.vmem [shape: f32[8,36], index: 2, kind: input, shape index: {}]   ;;  %s1421_s3 = inlined_call_operand.vmem [shape: f32[8,1], index: 3, kind: input, shape index: {}]   ;;  %s1422_s4 = inlined_call_operand.vmem [shape: f32[8,72], index: 4, kind: input, shape index: {}]   ;;  %s1423_s5 = inlined_call_operand.vmem [shape: f32[8,1], index: 5, kind: input, shape index: {}]   ;;  %s1424_s6 = inlined_call_operand.vmem [shape: f32[2,64], index: 6, kind: input, shape index: {}]   ;;  %s1425_s7 = inlined_call_operand.hbm [shape: f32[2,8,64], index: 7, kind: output, shape index: {}]  }
   0x1   :  { %13 = vsyncpa [#allocation4], 0 }
   0x2   :  { %15 = vsyncpa [#allocation4 + $0x1], 0  ;;  %s1199_s24 = smov 0   ;;  %s1201_s25 = smov 0  }
   0x3   :  { %s1203_s26 = smov 0   ;;  %s1205_s27 = smov 0  }
   0x4 LB: > { %s1220_s28 = sadd.s32 4294967295, %s1134_s27   ;;  %s815_s29 = sadd.s32 4294967294, %s1134_s27   ;;  %s1134_s27 = sphi %s1205_s27, %s1441_s27   ;;  %s1130_s26 = sphi %s1203_s26, %s1440_s26   ;;  %s1126_s25 = sphi %s1201_s25, %s1439_s25   ;;  %s1122_s24 = sphi %s1199_s24, %s1438_s24  }
   0x5   : > { %s1224_s30 = sadd.s32 1, %s1134_s27   ;;  %s180_s8 = sadd.s32 1, %s1130_s26 }
   0x6   : > { %s177_s9 = ssub.s32 %s1134_s27, %s1224_s30  ;;  %p190_p0 = scmp.ne.s32.totalorder %s1130_s26, %s1126_s25 }
   0x7   : > { %p178_p1 = scmp.eq.s32.totalorder %s177_s9, 0  ;;  %p191_p2 = scmp.eq.s32.totalorder %s1220_s28, 1 }
   0x8   : > { %p196_p3 = scmp.ne.s32.totalorder %s1126_s25, %s1122_s24  ;;  %p197_p4 = scmp.eq.s32.totalorder %s815_s29, 1 }
   0x9   : > { %s1235_s10 = scalar_select %p178_p1, %s1130_s26, %s180_s8  }
   0xa   : > { %p1237_p5 = por %p191_p2, %p190_p0  ;;  %p1241_p6 = por %p197_p4, %p196_p3 }
   0xb   : > { %p816_p7 = scmp.ge.s32.totalorder %s1134_s27, 1  ;;  %p204_p8 = scmp.lt.s32.totalorder %s1134_s27, 3 }
   0xc   : > { %s1429_s11 = scalar_select %p1237_p5, 1, 0 }
   0xd   : > { %s1430_s12 = scalar_select %p1241_p6, 1, 0 }
   0xe   : > { %p1426_p9 = scmp.eq.s32.totalorder %s1220_s28, 0  ;;  %p1248_p10 = pnand %p816_p7, %p204_p8 }
   0xf   : > { %s1136_s14 = smov [#allocation2]   ;;  %s1040_s19 = scalar_lea.hbm %s1419_s1, 8192 }
  0x10   : > { %s1431_s13 = scalar_select %p1248_p10, 1, 0 }
  0x11   : > { %s216_s15 = sshll.u32 %s1136_s14, 4  ;;  %p972_p11 = pneg %p1248_p10  ;;  %s217_s15 = int_to_ptr.vmem [resolvable:$true] %s216_s15 }
  0x12   : > { %p1041_p13 = scmp.ne.s32.totalorder %s1419_s1, %s1040_s19  ;;  %p1047_p3 = scmp.lt.u32.totalorder %s1040_s19, %s1419_s1 }
  0x13   : > { %p1256_p12 = pnand %p1426_p9, %p972_p11 }
  0x15   : > { %p1042_p0 = pneg %p1256_p12 }
  0x17   : > { %p1043_p1 = pnand %p1042_p0, %p1041_p13 }
  0x19   : > { %p1044_p2 = pneg %p1043_p1 }
  0x1b   : > { %p1049_p4 = pnand %p1047_p3, %p1044_p2 }
  0x1d   : > { %1052 = shalt.err (!%p1049_p4)
}
  0x1e   : > { %s1053_s29 = scalar_lea.vmem %s217_s15, 8192  ;;  %p1061_p9 = scmp.lt.s32.totalorder %s217_s15, %s217_s15 }
  0x1f   : > { %p1054_p7 = scmp.ne.s32.totalorder %s217_s15, %s1053_s29  ;;  %p1062_p6 = scmp.lt.s32.totalorder %s1053_s29, %s1053_s29 }
  0x21   : > { %p1056_p8 = pnand %p1054_p7, %p1042_p0  ;;  %p1063_p5 = por %p1062_p6, %p1061_p9 }
  0x23   : > { %p1057_p11 = pneg %p1056_p8 }
  0x25   : > { %p1064_p10 = pnand %p1063_p5, %p1057_p11 }
  0x27   : > { %1067 = shalt.err (!%p1064_p10)
}
  0x28   : > { %s1137_s8 = smov 256   ;;  %s1138_s9 = smov 16  }
  0x29   : > { %975 = dma.hbm_to_vmem [thread:$0]  (!%p1256_p12), %s1419_s1, 8192, %s217_s15, [#allocation3], %s1137_s8, %s1137_s8, %s1138_s9  }
  0x2a   : > { %p1433_p13 = scmp.ne.s32.totalorder %s1431_s13, 0 }
  0x2b   : > { %p1434_p1 = scmp.eq.s32.totalorder (!%p1433_p13), %s1220_s28, 0 }
  0x2c   : > { %255 = sbr.rel (%p1433_p13) target bundleno = 1405 (0x57d), region = 48 }
  0x33   : > { %1113 = dma.done.wait (%p1434_p1), [#allocation3], 8192   ;;  %p1435_p0 = pmov %p1434_p1 }
  0x34   : > { %v294_v0 = vld [vmem:[#allocation2 + $0x8] sm:$0xff]  ;;  %v296_v1 = vld [vmem:[#allocation2 + $0x18] sm:$0xff]  ;;  %v293_v2 = vld [vmem:[#allocation2] sm:$0xff]  ;;  %p287_p5 = scmp.lt.s32.totalorder %s1220_s28, 1  ;;  %s1139_s20 = smov 64   ;;  %vm448_vm0 = vcmask 72704  }
  0x35   : > { %1115 = vsyncadd (%p1435_p0), [#allocation3], 4294959104  ;;  %v884_v3 = vpack.c.bf16 %v296_v1, %v294_v0  ;;  %v295_v4 = vld [vmem:[#allocation2 + $0x10] sm:$0xff]  ;;  %v298_v5 = vld [vmem:[#allocation2 + $0x28] sm:$0xff]  ;;  %s1140_s23 = smov 2   ;;  %s1141_s9 = smov 16  }
  0x36   : > { %v300_v6 = vld [vmem:[#allocation2 + $0x38] sm:$0xff]  ;;  %v886_v7 = vpack.c.bf16 %v295_v4, %v293_v2  ;;  %v297_v9 = vld [vmem:[#allocation2 + $0x20] sm:$0xff]  ;;  %v299_v10 = vld [vmem:[#allocation2 + $0x30] sm:$0xff]  ;;  %s288_s13 = scalar_select %p287_p5, %s1220_s28, 1  ;;  %vm450_vm1 = vcmask 596992   ;;  %vm1152_vm2 = vmmov 0  }
  0x37   : > { %v888_v8 = vpack.c.bf16 %v300_v6, %v298_v5  ;;  %v302_v11 = vld [vmem:[#allocation2 + $0x48] sm:$0xff]  ;;  %885 = vmatprep.subr.bf16.mxu0 %v884_v3  ;;  %v304_v12 = vld [vmem:[#allocation2 + $0x58] sm:$0xff]  ;;  %v890_v13 = vpack.c.bf16 %v299_v10, %v297_v9  ;;  %v301_v15 = vld [vmem:[#allocation2 + $0x40] sm:$0xff]  ;;  %s1142_s14 = smov 9   ;;  %s1143_s17 = smov 8   ;;  %vm515_vm3 = vcmask 1043456  }
  0x38   : > { %887 = vmatpush1.bf16.msra.mxu0 %v886_v7  ;;  %v892_v14 = vpack.c.bf16 %v304_v12, %v302_v11  ;;  %v303_v16 = vld [vmem:[#allocation2 + $0x50] sm:$0xff]  ;;  %v306_v17 = vld [vmem:[#allocation2 + $0x68] sm:$0xff]  ;;  %v308_v18 = vld [vmem:[#allocation2 + $0x78] sm:$0xff]  ;;  %s833_s15 = sshll.u32 %s288_s13, 3  ;;  %s1144_s13 = smov 10   ;;  %vm527_vm4 = vcmask 293888  }
  0x39   : > { %889 = vmatprep.subr.bf16.mxu0 %v888_v8  ;;  %v894_v19 = vpack.c.bf16 %v303_v16, %v301_v15  ;;  %v896_v20 = vpack.c.bf16 %v308_v18, %v306_v17  ;;  %v305_v21 = vld [vmem:[#allocation2 + $0x60] sm:$0xff]  ;;  %v307_v22 = vld [vmem:[#allocation2 + $0x70] sm:$0xff]  ;;  %v310_v23 = vld [vmem:[#allocation2 + $0x88] sm:$0xff]  ;;  %s291_s19 = scalar_lea.vmem %s1418_s0, %s833_s15  ;;  %s1145_s15 = smov 18   ;;  %vm653_vm5 = vcmask 588800   ;;  %vm728_vm6 = vcmask 523264  }
  0x3a   : > { %v312_v24 = vld [vmem:[#allocation2 + $0x98] sm:$0xff]  ;;  %v898_v25 = vpack.c.bf16 %v307_v22, %v305_v21  ;;  %v309_v27 = vld [vmem:[#allocation2 + $0x80] sm:$0xff]  ;;  %v311_v28 = vld [vmem:[#allocation2 + $0x90] sm:$0xff]  ;;  %s1147_s16 = smov 119   ;;  %s1148_s18 = smov 127  }
  0x3b   : > { %v900_v26 = vpack.c.bf16 %v312_v24, %v310_v23  ;;  %v314_v29 = vld [vmem:[#allocation2 + $0xa8] sm:$0xff]  ;;  %v316_v30 = vld [vmem:[#allocation2 + $0xb8] sm:$0xff]  ;;  %v902_v31 = vpack.c.bf16 %v311_v28, %v309_v27  ;;  %v313_v33 = vld [vmem:[#allocation2 + $0xa0] sm:$0xff]  ;;  %s1151_s21 = smov 112   ;;  %s1154_s22 = smov 118  }
  0x3c   : > { %891 = vmatpush1.bf16.msra.mxu0 %v890_v13  ;;  %v904_v32 = vpack.c.bf16 %v316_v30, %v314_v29  ;;  %v315_v34 = vld [vmem:[#allocation2 + $0xb0] sm:$0xff]  ;;  %v318_v35 = vld [vmem:[#allocation2 + $0xc8] sm:$0xff]  ;;  %v320_v36 = vld [vmem:[#allocation2 + $0xd8] sm:$0xff]  ;;  %s1157_s29 = smov 111   ;;  %p1436_p9 = scmp.ne.s32.totalorder %s1429_s11, 0 }
  0x3d   : > { %893 = vmatprep.subr.bf16.mxu0 %v892_v14  ;;  %v906_v37 = vpack.c.bf16 %v315_v34, %v313_v33  ;;  %v908_v38 = vpack.c.bf16 %v320_v36, %v318_v35  ;;  %v317_v39 = vld [vmem:[#allocation2 + $0xc0] sm:$0xff]  ;;  %v319_v40 = vld [vmem:[#allocation2 + $0xd0] sm:$0xff]  ;;  %v322_v42 = vld [vmem:[#allocation2 + $0xe8] sm:$0xff] }
  0x3e   : > { %v1287_v41 = vld [vmem:[%s291_s19] sm:$0xff]  ;;  %v324_v43 = vld [vmem:[#allocation2 + $0xf8] sm:$0xff]  ;;  %v910_v45 = vpack.c.bf16 %v319_v40, %v317_v39  ;;  %v323_v48 = vld [vmem:[#allocation2 + $0xf0] sm:$0xff]  ;;  %s1149_s19 = smov 126  }
  0x3f   : > { %v358_v44 = vcombine.high %v1287_v41, %v1287_v41  ;;  %v912_v46 = vpack.c.bf16 %v324_v43, %v322_v42  ;;  %v321_v47 = vld [vmem:[#allocation2 + $0xe0] sm:$0xff]  ;;  %v326_v49 = vld [vmem:[#allocation2 + $0x108] sm:$0xff]  ;;  %v328_v50 = vld [vmem:[#allocation2 + $0x118] sm:$0xff]  ;;  %v1146_v43 = vmov 0.0|0.0  }
  0x40   : > { %895 = vmatpush1.bf16.msra.mxu0 %v894_v19  ;;  %v914_v51 = vpack.c.bf16 %v323_v48, %v321_v47  ;;  %v916_v52 = vpack.c.bf16 %v328_v50, %v326_v49  ;;  %v325_v53 = vld [vmem:[#allocation2 + $0x100] sm:$0xff]  ;;  %v327_v54 = vld [vmem:[#allocation2 + $0x110] sm:$0xff]  ;;  %v330_v55 = vld [vmem:[#allocation2 + $0x128] sm:$0xff]  ;;  %948 = vmatprep.subr.bf16.mxu1 %v1146_v43 }
  0x41   : > { %897 = vmatprep.subr.bf16.mxu0 %v896_v20  ;;  %424 = vmatprep.mubr.f32.mxu0 %v358_v44  ;;  %v332_v56 = vld [vmem:[#allocation2 + $0x138] sm:$0xff]  ;;  %v918_v57 = vpack.c.bf16 %v327_v54, %v325_v53  ;;  %v329_v59 = vld [vmem:[#allocation2 + $0x120] sm:$0xff]  ;;  %v331_v60 = vld [vmem:[#allocation2 + $0x130] sm:$0xff] }
  0x42   : > { %v920_v58 = vpack.c.bf16 %v332_v56, %v330_v55  ;;  %v334_v61 = vld [vmem:[#allocation2 + $0x148] sm:$0xff]  ;;  %v336_v62 = vld [vmem:[#allocation2 + $0x158] sm:$0xff]  ;;  %v922_v63 = vpack.c.bf16 %v331_v60, %v329_v59  ;;  %v333_v1 = vld [vmem:[#allocation2 + $0x140] sm:$0xff] }
  0x43   : > { %v924_v0 = vpack.c.bf16 %v336_v62, %v334_v61  ;;  %v335_v2 = vld [vmem:[#allocation2 + $0x150] sm:$0xff]  ;;  %v338_v3 = vld [vmem:[#allocation2 + $0x168] sm:$0xff]  ;;  %v340_v4 = vld [vmem:[#allocation2 + $0x178] sm:$0xff]  ;;  %v1155_v61 = vmov 0  }
  0x44   : > { %899 = vmatpush1.bf16.msra.mxu0 %v898_v25  ;;  %v926_v5 = vpack.c.bf16 %v335_v2, %v333_v1  ;;  %v928_v6 = vpack.c.bf16 %v340_v4, %v338_v3  ;;  %v337_v7 = vld [vmem:[#allocation2 + $0x160] sm:$0xff]  ;;  %v339_v8 = vld [vmem:[#allocation2 + $0x170] sm:$0xff]  ;;  %v342_v9 = vld [vmem:[#allocation2 + $0x188] sm:$0xff]  ;;  %1038 = vset.pattern.permute.xlu1 %v1155_v61 }
  0x45   : > { %901 = vmatprep.subr.bf16.mxu0 %v900_v26  ;;  %v344_v10 = vld [vmem:[#allocation2 + $0x198] sm:$0xff]  ;;  %v930_v11 = vpack.c.bf16 %v339_v8, %v337_v7  ;;  %v341_v13 = vld [vmem:[#allocation2 + $0x180] sm:$0xff]  ;;  %v343_v14 = vld [vmem:[#allocation2 + $0x190] sm:$0xff]  ;;  %1037 = vset.pattern.permute.xlu0 %v1155_v61 }
  0x46   : > { %v932_v12 = vpack.c.bf16 %v344_v10, %v342_v9  ;;  %v346_v15 = vld [vmem:[#allocation2 + $0x1a8] sm:$0xff]  ;;  %v348_v16 = vld [vmem:[#allocation2 + $0x1b8] sm:$0xff]  ;;  %v934_v17 = vpack.c.bf16 %v343_v14, %v341_v13  ;;  %v345_v19 = vld [vmem:[#allocation2 + $0x1a0] sm:$0xff] }
  0x47   : > { %v936_v18 = vpack.c.bf16 %v348_v16, %v346_v15  ;;  %v347_v20 = vld [vmem:[#allocation2 + $0x1b0] sm:$0xff]  ;;  %v350_v21 = vld [vmem:[#allocation2 + $0x1c8] sm:$0xff]  ;;  %v352_v22 = vld [vmem:[#allocation2 + $0x1d8] sm:$0xff] }
  0x48   : > { %903 = vmatpush1.bf16.msra.mxu0 %v902_v31  ;;  %v938_v23 = vpack.c.bf16 %v347_v20, %v345_v19  ;;  %v940_v24 = vpack.c.bf16 %v352_v22, %v350_v21  ;;  %v349_v25 = vld [vmem:[#allocation2 + $0x1c0] sm:$0xff]  ;;  %v351_v26 = vld [vmem:[#allocation2 + $0x1d0] sm:$0xff]  ;;  %v354_v27 = vld [vmem:[#allocation2 + $0x1e8] sm:$0xff] }
  0x49   : > { %905 = vmatprep.subr.bf16.mxu0 %v904_v32  ;;  %v356_v28 = vld [vmem:[#allocation2 + $0x1f8] sm:$0xff]  ;;  %v942_v29 = vpack.c.bf16 %v351_v26, %v349_v25  ;;  %v353_v31 = vld [vmem:[#allocation2 + $0x1e0] sm:$0xff]  ;;  %v355_v32 = vld [vmem:[#allocation2 + $0x1f0] sm:$0xff] }
  0x4a   : > { %v944_v30 = vpack.c.bf16 %v356_v28, %v354_v27  ;;  %v946_v33 = vpack.c.bf16 %v355_v32, %v353_v31  ;;  %v825_v36 = vld [vmem:[%s1424_s6 + $0x1] ss:$0 sm:$0xff] }
  0x4b   : > { %v521_v62 = vld [vmem:[%s1421_s3] sm:$0xff] }
  0x4c   : > { %907 = vmatpush1.bf16.msra.mxu0 %v906_v37  ;;  %v1298_v37 = vld [vmem:[%s1424_s6] ss:$0 sm:$0xff] }
  0x4d   : > { %909 = vmatprep.subr.bf16.mxu0 %v908_v38  ;;  %v520_v13 = vld [vmem:[%s1420_s2] sm:$0xff] }
  0x4e   : > { %v647_v28 = vld [vmem:[%s1423_s5] sm:$0xff] }
  0x50   : > { %911 = vmatpush1.bf16.msra.mxu0 %v910_v45 }
  0x51   : > { %913 = vmatprep.subr.bf16.mxu0 %v912_v46 }
  0x54   : > { %915 = vmatpush1.bf16.msra.mxu0 %v914_v51 }
  0x55   : > { %917 = vmatprep.subr.bf16.mxu0 %v916_v52 }
  0x58   : > { %919 = vmatpush1.bf16.msra.mxu0 %v918_v57 }
  0x59   : > { %921 = vmatprep.subr.bf16.mxu0 %v920_v58  ;;  %v1153_v58 = vmov 0.0  }
  0x5a   : > { %860 = vmatprep.mubr.msk.f32.mxu1 %vm1152_vm2, %v1153_v58 }
  0x5c   : > { %923 = vmatpush1.bf16.msra.mxu0 %v922_v63 }
  0x5d   : > { %925 = vmatprep.subr.bf16.mxu0 %v924_v0 }
  0x60   : > { %927 = vmatpush1.bf16.msra.mxu0 %v926_v5 }
  0x61   : > { %929 = vmatprep.subr.bf16.mxu0 %v928_v6 }
  0x64   : > { %931 = vmatpush1.bf16.msra.mxu0 %v930_v11 }
  0x65   : > { %933 = vmatprep.subr.bf16.mxu0 %v932_v12 }
  0x68   : > { %935 = vmatpush1.bf16.msra.mxu0 %v934_v17 }
  0x69   : > { %937 = vmatprep.subr.bf16.mxu0 %v936_v18 }
  0x6c   : > { %939 = vmatpush1.bf16.msra.mxu0 %v938_v23 }
  0x6d   : > { %941 = vmatprep.subr.bf16.mxu0 %v940_v24 }
  0x70   : > { %943 = vmatpush1.bf16.msra.mxu0 %v942_v29 }
  0x71   : > { %945 = vmatprep.subr.bf16.mxu0 %v944_v30 }
  0x74   : > { %947 = vmatpush1.bf16.msra.mxu0 %v946_v33 }
  0x77   : > { %425 = vmatmul.mubr.f32.vlgmr.msra.gmra.mrb[0].mxu0 %v1287_v41 }
 0x14a   : > { %v426_v34 = vpop.f32.mrb[0].mxu0 }
 0x14b   : > { %432 = vrot.lane.b32.xlu0 %v426_v34, %s1139_s20  ;;  %v428_v35 = vpop.f32.mrb[1].mxu0 }
 0x14f   : > { %437 = vrot.lane.b32.xlu0 %v428_v35, %s1139_s20  ;;  %s1150_s20 = smov 120  }
 0x153   : > { %462 = vrot.lane.b32.xlu0 %v825_v36, %s1140_s23  ;;  %s1156_s23 = smov 110  }
 0x157   : > { %475 = vrot.lane.b32.xlu0 %v1298_v37, %s1141_s9 }
 0x1bd   : > { %v433_v38 = vpop.permute.xlu0 %432 }
 0x1be   : > { %v435_v40 = vmax.f32 %v426_v34, %v433_v38 }
 0x1c1   : > { %v438_v39 = vpop.permute.xlu0 %437 }
 0x1c2   : > { %v440_v41 = vmax.f32 %v428_v35, %v438_v39 }
 0x1c4   : > { %v441_v42 = vmax.f32 %v435_v40, %v440_v41  ;;  %v646_v41 = vld [vmem:[%s1422_s4] sm:$0xff] }
 0x1c5   : > { %v1304_v44 = vpop.permute.xlu0 %462 }
 0x1c6   : > { %445 = vrot.lane.b32.xlu1 %v441_v42, %s1142_s14 }
 0x1c9   : > { %v1314_v52 = vpop.permute.xlu0 %475 }
 0x1ca   : > { %467 = vrot.lane.b32.xlu1 %v1298_v37, %s1143_s17 }
 0x1ce   : > { %471 = vrot.lane.b32.xlu1 %v825_v36, %s1144_s13 }
 0x1d2   : > { %479 = vrot.lane.b32.xlu1 %v825_v36, %s1145_s15 }
 0x238   : > { %v446_v45 = vpop.permute.xlu1 %445 }
 0x239   : > { %v449_v46 = vsel %vm448_vm0, 0.0, %v446_v45 }
 0x23a   : > { %v451_v47 = vsel %vm450_vm1, %v449_v46, 0.0 }
 0x23b   : > { %497 = vrot.lane.b32.xlu1 %v451_v47, %s1147_s16  ;;  %v484_v48 = vrot.slane %v451_v47, 4  ;;  %v465_v51 = vmul.f32 %v1304_v44, %v451_v47  ;;  %v478_v55 = vmul.f32 %v1314_v52, %v451_v47  ;;  %v456_v1 = vmul.f32 %v1298_v37, %v451_v47 }
 0x23c   : > { %v1309_v49 = vpop.permute.xlu1 %467 }
 0x23d   : > { %v470_v50 = vmul.f32 %v1309_v49, %v451_v47  ;;  %485 = vrot.lane.b32.xlu0 %v484_v48, %s1148_s18 }
 0x23f   : > { %v493_v53 = vrot.slane %v470_v50, 4  ;;  %489 = vrot.lane.b32.xlu1 %v465_v51, %s1149_s19 }
 0x240   : > { %v1317_v54 = vpop.permute.xlu1 %471 }
 0x241   : > { %v474_v56 = vmul.f32 %v1317_v54, %v451_v47  ;;  %494 = vrot.lane.b32.xlu0 %v493_v53, %s1150_s20 }
 0x243   : > { %v501_v57 = vrot.slane %v474_v56, 4  ;;  %506 = vrot.lane.b32.xlu1 %v478_v55, %s1151_s21 }
 0x244   : > { %v480_v59 = vpop.permute.xlu1 %479 }
 0x245   : > { %v482_v60 = vmul.f32 %v480_v59, %v451_v47  ;;  %502 = vrot.lane.b32.xlu0 %v501_v57, %s1154_s22 }
 0x247   : > { %513 = vrot.lane.b32.xlu1 %v482_v60, %s1156_s23 }
 0x249   : > { %509 = vrot.lane.b32.xlu0 %v484_v48, %s1157_s29 }
 0x24d   : > { %524 = vperm.xlu0 %1037, %v521_v62  }
 0x2ad   : > { %v498_v63 = vpop.permute.xlu1 %497 }
 0x2af   : > { %v486_v0 = vpop.permute.xlu0 %485 }
 0x2b0   : > { %v516_v4 = vsel %vm515_vm3, %v456_v1, %v486_v0 }
 0x2b1   : > { %v490_v2 = vpop.permute.xlu1 %489 }
 0x2b3   : > { %v495_v3 = vpop.permute.xlu0 %494 }
 0x2b4   : > { %v517_v5 = vsel %vm515_vm3, %v490_v2, %v495_v3 }
 0x2b5   : > { %v949_v6 = vpack.c.bf16 %v517_v5, %v516_v4  ;;  %v507_v8 = vpop.permute.xlu1 %506 }
 0x2b7   : > { %950 = vmatpush3.bf16.msra.mxu1 %v949_v6  ;;  %v503_v7 = vpop.permute.xlu0 %502 }
 0x2b8   : > { %951 = vmatprep.subr.bf16.mxu1 %v1146_v43  ;;  %v518_v10 = vsel %vm515_vm3, %v498_v63, %v503_v7 }
 0x2b9   : > { %v514_v14 = vpop.permute.xlu1 %513 }
 0x2bb   : > { %v510_v9 = vpop.permute.xlu0 %509 }
 0x2bc   : > { %v519_v11 = vsel %vm515_vm3, %v507_v8, %v510_v9 }
 0x2bd   : > { %v952_v12 = vpack.c.bf16 %v519_v11, %v518_v10 }
 0x2bf   : > { %953 = vmatpush3.bf16.msra.mxu1 %v952_v12 }
 0x2c0   : > { %858 = vmatprep.subr.mxu1 %v1153_v58 }
 0x2c3   : > { %859 = vmatpush3.msk.msra.mxu1 %vm515_vm3, %v514_v14 }
 0x2c4   : > { %861 = vmatmul.mubr.msk.f32.vlgmr.msra.gmra.mrb[0].mxu1 %vm527_vm4, %v520_v13  ;;  %954 = vmatprep.subr.bf16.mxu1 %v1146_v43 }
 0x2c5   : > { %881 = vmatprep.mubr.msk.f32.mxu1 %vm1152_vm2, %v1153_v58 }
 0x2cc   : > { %v525_v15 = vpop.permute.xlu0 %524 }
 0x397   : > { %v599_v16 = vpop.f32.mrb[0].mxu1 }
 0x398   : > { %v600_v17 = vadd.f32 %v599_v16, %v525_v15  ;;  %v862_v18 = vpop.f32.mrb[1].mxu1 }
 0x39a   : > { %v603_v19 = vmax.f32 %v600_v17, 0.0 }
 0x39c   : > { %605 = vrot.lane.b32.xlu1 %v603_v19, %s1142_s14 }
 0x40e   : > { %v606_v20 = vpop.permute.xlu1 %605 }
 0x40f   : > { %v608_v21 = vsel %vm448_vm0, 0.0, %v606_v20 }
 0x410   : > { %v609_v22 = vsel %vm450_vm1, %v608_v21, 0.0 }
 0x411   : > { %617 = vrot.lane.b32.xlu1 %v609_v22, %s1148_s18  ;;  %v611_v23 = vmul.f32 %v609_v22, %v1304_v44  ;;  %v612_v24 = vmul.f32 %v609_v22, %v1309_v49  ;;  %v613_v25 = vmul.f32 %v609_v22, %v1317_v54  ;;  %v614_v26 = vmul.f32 %v609_v22, %v1314_v52 }
 0x412   : > { %v615_v27 = vmul.f32 %v609_v22, %v480_v59  ;;  %v610_v29 = vmul.f32 %v1298_v37, %v609_v22 }
 0x413   : > { %621 = vrot.lane.b32.xlu0 %v611_v23, %s1149_s19  ;;  %s284_s19 = sand.u32 1, %s1126_s25  }
 0x414   : > { %s731_s17 = scalar_lea.sflag [#allocation4], %s284_s19 }
 0x415   : > { %625 = vrot.lane.b32.xlu1 %v612_v24, %s1150_s20  ;;  %s821_s20 = sshll.u32 %s284_s19, 3 }
 0x417   : > { %628 = vrot.lane.b32.xlu0 %v609_v22, %s1147_s16 }
 0x419   : > { %632 = vrot.lane.b32.xlu1 %v613_v25, %s1154_s22  ;;  %s286_s22 = scalar_lea.vmem [#allocation5], %s821_s20 }
 0x41b   : > { %636 = vrot.lane.b32.xlu0 %v614_v26, %s1151_s21  ;;  %s830_s21 = sshll.u32 %s1220_s28, 7  ;;  %s1158_s28 = smov [#allocation5]  }
 0x41c   : > { %s1376_s9 = scalar_lea.hbm %s1425_s7, %s830_s21  ;;  %s1072_s14 = sshll.u32 %s1158_s28, 4  ;;  %s1073_s14 = int_to_ptr.vmem [resolvable:$false] %s1072_s14 }
 0x41d   : > { %639 = vrot.lane.b32.xlu1 %v609_v22, %s1157_s29  ;;  %s1074_s15 = scalar_lea.vmem %s1073_s14, 256 }
 0x41f   : > { %643 = vrot.lane.b32.xlu0 %v615_v27, %s1156_s23  ;;  %s744_s23 = sshll.u32 %s286_s22, 4  ;;  %s1378_s23 = int_to_ptr.vmem [resolvable:$true] %s744_s23 }
 0x420   : > { %s1068_s13 = scalar_lea.vmem %s1378_s23, 128  ;;  %p1075_p2 = scmp.lt.s32.totalorder %s1378_s23, %s1073_s14 }
 0x421   : > { %650 = vperm.xlu1 %1038, %v647_v28   ;;  %p1069_p6 = scmp.ne.s32.totalorder %s1378_s23, %s1068_s13  ;;  %p1076_p3 = scmp.lt.s32.totalorder %s1074_s15, %s1068_s13 }
 0x423   : > { %p1070_p10 = pnand %p1069_p6, %p1436_p9  ;;  %p1077_p4 = por %p1076_p3, %p1075_p2 }
 0x425   : > { %p1071_p12 = pneg %p1070_p10 }
 0x427   : > { %p1078_p7 = pnand %p1077_p4, %p1071_p12 }
 0x483   : > { %v618_v30 = vpop.permute.xlu1 %617 }
 0x484   : > { %v955_v31 = vpack.c.bf16 %v618_v30, %v610_v29 }
 0x485   : > { %v622_v32 = vpop.permute.xlu0 %621 }
 0x486   : > { %956 = vmatpush3.bf16.msra.mxu1 %v955_v31 }
 0x487   : > { %v626_v33 = vpop.permute.xlu1 %625  ;;  %957 = vmatprep.subr.bf16.mxu1 %v1146_v43 }
 0x488   : > { %v958_v34 = vpack.c.bf16 %v626_v33, %v622_v32 }
 0x489   : > { %v629_v35 = vpop.permute.xlu0 %628 }
 0x48a   : > { %959 = vmatpush3.bf16.msra.mxu1 %v958_v34 }
 0x48b   : > { %v633_v36 = vpop.permute.xlu1 %632  ;;  %960 = vmatprep.subr.bf16.mxu1 %v1146_v43 }
 0x48c   : > { %v961_v38 = vpack.c.bf16 %v633_v36, %v629_v35 }
 0x48d   : > { %v637_v39 = vpop.permute.xlu0 %636 }
 0x48e   : > { %962 = vmatpush3.bf16.msra.mxu1 %v961_v38 }
 0x48f   : > { %v640_v40 = vpop.permute.xlu1 %639  ;;  %963 = vmatprep.subr.bf16.mxu1 %v1146_v43 }
 0x490   : > { %v964_v37 = vpack.c.bf16 %v640_v40, %v637_v39 }
 0x491   : > { %v644_v42 = vpop.permute.xlu0 %643 }
 0x492   : > { %965 = vmatpush3.bf16.msra.mxu1 %v964_v37 }
 0x493   : > { %879 = vmatprep.subr.mxu1 %v1153_v58 }
 0x496   : > { %880 = vmatpush3.msra.mxu1 %v644_v42 }
 0x497   : > { %882 = vmatmul.mubr.msk.f32.vlgmr.msra.gmra.mrb[2].mxu1 %vm653_vm5, %v646_v41 }
 0x4a0   : > { %v651_v44 = vpop.permute.xlu1 %650 }
 0x56a   : > { %v723_v45 = vpop.f32.mrb[2].mxu1 }
 0x56b   : > { %v724_v43 = vadd.f32 %v723_v45, %v651_v44  ;;  %v883_v46 = vpop.f32.mrb[3].mxu1 }
 0x56d   : > { %v727_v47 = vmax.f32 %v724_v43, 0.0 }
 0x56f   : > { %729 = vst.msk [vmem:[%s286_s22] sm:$0xff] %vm728_vm6, %v727_v47 }
 0x570   : > { %1081 = shalt.err (!%p1078_p7)
}
 0x571   : > { %s1082_s16 = scalar_lea.hbm %s1376_s9, 128  ;;  %s1086_s20 = scalar_lea.hbm %s1425_s7, 256 }
 0x572   : > { %p1083_p8 = scmp.ne.s32.totalorder %s1376_s9, %s1082_s16  ;;  %p1087_p1 = scmp.lt.u32.totalorder %s1376_s9, %s1425_s7 }
 0x573   : > { %p1088_p0 = scmp.lt.u32.totalorder %s1086_s20, %s1082_s16  ;;  %p1090_p6 = scmp.lt.u32.totalorder %s1082_s16, %s1376_s9 }
 0x574   : > { %p1084_p11 = pnand %p1083_p8, %p1436_p9 }
 0x575   : > { %p1089_p5 = por %p1088_p0, %p1087_p1 }
 0x576   : > { %p1085_p13 = pneg %p1084_p11 }
 0x577   : > { %p1091_p10 = por %p1090_p6, %p1089_p5 }
 0x579   : > { %p1092_p12 = pnand %p1091_p10, %p1085_p13 }
 0x57b   : > { %1095 = shalt.err (!%p1092_p12)
}
 0x57c   : > { %970 = dma.vmem_to_hbm [thread:$0]  (%p1436_p9), %s1378_s23, 128, %s1376_s9, %s731_s17  }
 0x57d PF: > { %p982_p2 = scmp.ge.s32.totalorder %s1134_s27, 2  ;;  %s756_s29 = sand.u32 1, %s1122_s24  }
 0x57e   : > { %p1437_p3 = scmp.ne.s32.totalorder %s1430_s12, 0  ;;  %s757_s8 = scalar_lea.sflag [#allocation4], %s756_s29 }
 0x580   : > { %p977_p4 = pnand %p982_p2, %p1437_p3 }
 0x582   : > { %1117 = dma.done.wait (!%p977_p4), %s757_s8, 128  }
 0x583   : > { %1119 = vsyncadd (!%p977_p4), %s757_s8, 4294967168  ;;  %p18_p7 = scmp.ge.s32.totalorder %s1224_s30, 4   ;;  %s1438_s24 = smov %s1126_s25 }
 0x584   : > { %s1439_s25 = smov %s1130_s26  ;;  %s1440_s26 = smov %s1235_s10 }
 0x585   : > { %s1441_s27 = smov %s1224_s30  ;;  %20 = sbr.rel (!%p18_p7) target bundleno = 4 (0x4), region = 88 }
 0x58c   :  { %762 = vsyncpa [#allocation3], 1 }
 0x58d   :  { %764 = vsyncpa [#allocation3 + $0x1], 1 }
 0x58e   :  { %765 = vsyncpa [#allocation4], 1 }
 0x58f   :  { %767 = vsyncpa [#allocation4 + $0x1], 1 }

</bundles_post_ra>
